<compile_context>
chip_gen: v7x
topology: tpu7x:2x2x1
jax: 0.10.0
libtpu: 0.0.40
codegen_flags: <defaults>
</compile_context>

<pallas_src>
import functools
import math

import jax
import jax.numpy as jnp
from jax.experimental import pallas as pl
from jax.experimental.pallas import tpu as pltpu


_VMEM_LIMIT_BYTES = 32 * 1024 * 1024   # explicit scoped limit (raises v5e default)
_LIVE_BLOCK_BUDGET = 20 * 1024 * 1024  # headroom for live (double-buffered) blocks
_ONEPASS_MAX_SLAB = 6 * 1024 * 1024    # per-image (C, HW) slab for the 1-pass path


def _round_up(v, m):
    return (v + m - 1) // m * m


def _pick_spatial_tile(hw_padded, c, itemsize):
    """Largest multiple of 128 dividing hw_padded whose live blocks fit VMEM.

    Per grid step the tiled kernel keeps an x-in block and an out block live,
    each double-buffered -> ~4 copies of (C, tp) resident.
    """
    cap = (_LIVE_BLOCK_BUDGET // (4 * c * itemsize)) // 128 * 128
    cap = max(cap, 128)
    n128 = hw_padded // 128
    best = 128
    d = 1
    while d * d <= n128:
        if n128 % d == 0:
            for q in (d, n128 // d):
                tp = q * 128
                if tp <= cap:
                    best = max(best, tp)
        d += 1
    return min(best, hw_padded)


# --------------------------------------------------------------------------
# Path A: fully fused single pass (mean -> MLP -> sigmoid -> scale)
# --------------------------------------------------------------------------
def _ca_onepass_kernel(x_ref, w1_ref, b1_ref, w2_ref, b2_ref, o_ref, *, inv_hw):
    x = x_ref[0].astype(jnp.float32)                        # (C, HW)
    m = jnp.sum(x, axis=-1, keepdims=True) * inv_hw         # (C, 1) channel mean
    h = jnp.dot(w1_ref[...], m,
                preferred_element_type=jnp.float32) + b1_ref[...]
    h = jnp.maximum(h, 0.0)                                  # ReLU, (Cr, 1)
    z = jnp.dot(w2_ref[...], h,
                preferred_element_type=jnp.float32) + b2_ref[...]
    g = 1.0 / (1.0 + jnp.exp(-z))                            # sigmoid, (C, 1)
    o_ref[0] = (x * g).astype(o_ref.dtype)                   # broadcast over lanes


# --------------------------------------------------------------------------
# Path B: one kernel, two-phase grid (N, 2, T)
#   phase 0: tiled spatial sum -> gate into VMEM scratch
#   phase 1: re-read x tiles, write x * gate
# --------------------------------------------------------------------------
def _ca_twophase_kernel(x_ref, w1_ref, b1_ref, w2_ref, b2_ref, o_ref,
                        acc_ref, gate_ref, *, inv_hw):
    p = pl.program_id(1)
    t = pl.program_id(2)

    @pl.when(p == 0)
    def _phase0():
        @pl.when(t == 0)
        def _():
            acc_ref[...] = jnp.zeros_like(acc_ref)

        acc_ref[...] += jnp.sum(x_ref[0].astype(jnp.float32), axis=-1,
                                keepdims=True)

        @pl.when(t == pl.num_programs(2) - 1)
        def _():
            m = acc_ref[...] * inv_hw                        # (C, 1)
            h = jnp.dot(w1_ref[...], m,
                        preferred_element_type=jnp.float32) + b1_ref[...]
            h = jnp.maximum(h, 0.0)                          # (Cr, 1)
            z = jnp.dot(w2_ref[...], h,
                        preferred_element_type=jnp.float32) + b2_ref[...]
            gate_ref[...] = 1.0 / (1.0 + jnp.exp(-z))        # (C, 1) in VMEM only

    @pl.when(p == 1)
    def _phase1():
        o_ref[0] = (x_ref[0].astype(jnp.float32)
                    * gate_ref[...]).astype(o_ref.dtype)


# --------------------------------------------------------------------------
# Wrapper
# --------------------------------------------------------------------------
def ca_layer(x_nchw, w1, b1, w2, b2, *, spatial_tile=None,
             onepass_max_slab_bytes=_ONEPASS_MAX_SLAB):
    """Channel attention.

    x_nchw : (N, C, H, W)
    w1     : (C//r, C)     first 1x1 conv weight (squeezed from (C//r, C, 1, 1))
    b1     : (C//r,)
    w2     : (C, C//r)     second 1x1 conv weight
    b2     : (C,)
    Passing spatial_tile forces the tiled two-phase path.
    """
    N, C, H, W = x_nchw.shape
    Cr = w1.shape[0]
    HW = H * W
    dtype = x_nchw.dtype
    itemsize = jnp.dtype(dtype).itemsize

    x = x_nchw.reshape(N, C, HW)            # free row-major reshape; lane = HW
    w1c = w1.astype(jnp.float32)
    w2c = w2.astype(jnp.float32)
    b1c = b1.reshape(Cr, 1).astype(jnp.float32)
    b2c = b2.reshape(C, 1).astype(jnp.float32)

    slab_bytes = C * HW * itemsize
    if spatial_tile is None and slab_bytes <= onepass_max_slab_bytes:
        # ---------- Path A: fused single pass (1 read + 1 write of x) ----------
        out = pl.pallas_call(
            functools.partial(_ca_onepass_kernel, inv_hw=1.0 / HW),
            out_shape=jax.ShapeDtypeStruct((N, C, HW), dtype),
            grid=(N,),
            in_specs=[
                pl.BlockSpec((1, C, HW), lambda n: (n, 0, 0)),
                pl.BlockSpec((Cr, C), lambda n: (0, 0)),
                pl.BlockSpec((Cr, 1), lambda n: (0, 0)),
                pl.BlockSpec((C, Cr), lambda n: (0, 0)),
                pl.BlockSpec((C, 1), lambda n: (0, 0)),
            ],
            out_specs=pl.BlockSpec((1, C, HW), lambda n: (n, 0, 0)),
            compiler_params=pltpu.CompilerParams(
                dimension_semantics=("parallel",),
                vmem_limit_bytes=_VMEM_LIMIT_BYTES),
        )(x, w1c, b1c, w2c, b2c)
        return out.reshape(N, C, H, W)

    # ---------- Path B: two-phase tiled kernel ----------
    HWp = _round_up(HW, 128)
    xp = x if HWp == HW else jnp.pad(x, ((0, 0), (0, 0), (0, HWp - HW)))

    tp = spatial_tile or _pick_spatial_tile(HWp, C, itemsize)
    assert HWp % tp == 0 and tp % 128 == 0, (HWp, tp)
    T = HWp // tp

    out = pl.pallas_call(
        functools.partial(_ca_twophase_kernel, inv_hw=1.0 / HW),
        out_shape=jax.ShapeDtypeStruct((N, C, HWp), dtype),
        grid=(N, 2, T),
        in_specs=[
            pl.BlockSpec((1, C, tp), lambda n, p, t: (n, 0, t)),
            pl.BlockSpec((Cr, C), lambda n, p, t: (0, 0)),
            pl.BlockSpec((Cr, 1), lambda n, p, t: (0, 0)),
            pl.BlockSpec((C, Cr), lambda n, p, t: (0, 0)),
            pl.BlockSpec((C, 1), lambda n, p, t: (0, 0)),
        ],
        # Phase 0 pins the out index to block 0 so the never-written buffer
        # is not flushed; phase 1 writes block t and it is flushed on change.
        out_specs=pl.BlockSpec((1, C, tp), lambda n, p, t: (n, 0, p * t)),
        scratch_shapes=[pltpu.VMEM((C, 1), jnp.float32),   # channel-sum acc
                        pltpu.VMEM((C, 1), jnp.float32)],  # gate
        compiler_params=pltpu.CompilerParams(
            dimension_semantics=("parallel", "arbitrary", "arbitrary"),
            vmem_limit_bytes=_VMEM_LIMIT_BYTES),
    )(xp, w1c, b1c, w2c, b2c)

    if HWp != HW:
        out = out[:, :, :HW]
    return out.reshape(N, C, H, W)


# --------------------------------------------------------------------------
# Pure-JAX reference (for correctness check)
# --------------------------------------------------------------------------
def reference_ca_layer(x, w1, b1, w2, b2):
    m = jnp.mean(x, axis=(2, 3))                          # (N, C)
    h = jnp.maximum(m @ w1.T + b1, 0.0)                   # (N, C//r)
    z = h @ w2.T + b2                                     # (N, C)
    g = 1.0 / (1.0 + jnp.exp(-z))
    return x * g[:, :, None, None]


# --------------------------------------------------------------------------
if __name__ == "__main__":
    key = jax.random.PRNGKey(0)
    N, C, H, W = 2, 64, 16, 16
    reduction = 16
    Cr = C // reduction

    k_x, k_w1, k_b1, k_w2, k_b2 = jax.random.split(key, 5)
    x = jax.random.normal(k_x, (N, C, H, W), jnp.float32)
    w1 = jax.random.normal(k_w1, (Cr, C), jnp.float32) / math.sqrt(C)
    b1 = 0.1 * jax.random.normal(k_b1, (Cr,), jnp.float32)
    w2 = jax.random.normal(k_w2, (C, Cr), jnp.float32) / math.sqrt(Cr)
    b2 = 0.1 * jax.random.normal(k_b2, (C,), jnp.float32)

    ref = reference_ca_layer(x, w1, b1, w2, b2)

    def check(out, name, target):
        assert out.shape == target.shape, (name, out.shape)
        assert bool(jnp.all(jnp.isfinite(out))), name
        rel = float(jnp.max(jnp.abs(out - target)) /
                    (jnp.max(jnp.abs(target)) + 1e-6))
        assert rel < 1e-5, f"{name}: rel err {rel}"

    # Path A: fused single pass (per-image slab fits VMEM).
    out_a = jax.block_until_ready(jax.jit(ca_layer)(x, w1, b1, w2, b2))
    check(out_a, "onepass", ref)

    # Path B: two-phase tiled fallback (forced via explicit spatial tile).
    fwd_b = jax.jit(functools.partial(ca_layer, spatial_tile=128))
    out_b = jax.block_until_ready(fwd_b(x, w1, b1, w2, b2))
    check(out_b, "twophase", ref)

    # Path B with HW not a multiple of 128 (exercises the zero-pad handling).
    Hs, Ws = 10, 10
    xs = jax.random.normal(k_x, (N, C, Hs, Ws), jnp.float32)
    refs = reference_ca_layer(xs, w1, b1, w2, b2)
    out_c = jax.block_until_ready(
        jax.jit(functools.partial(ca_layer, spatial_tile=128))(
            xs, w1, b1, w2, b2))
    check(out_c, "twophase_pad", refs)

    print("KERNEL_OK")
</pallas_src>

<mosaic_0001>
module attributes {stable_mosaic.version = 11 : i64} {
  func.func @_ca_onepass_kernel(%arg0: i32, %arg1: memref<1x64x256xf32, #tpu.memory_space<vmem>>, %arg2: memref<4x64xf32, #tpu.memory_space<vmem>>, %arg3: memref<4x1xf32, #tpu.memory_space<vmem>>, %arg4: memref<64x4xf32, #tpu.memory_space<vmem>>, %arg5: memref<64x1xf32, #tpu.memory_space<vmem>>, %arg6: memref<1x64x256xf32, #tpu.memory_space<vmem>>) attributes {dimension_semantics = [#tpu.dimension_semantics<parallel>], iteration_bounds = array<i64: 2>, scalar_prefetch = 0 : i64, scratch_operands = 0 : i64, tpu.core_type = #tpu.core_type<tc>, window_params = [{transform_indices = @transform_0, window_bounds = array<i64: 1, 64, 256>}, {pipeline_mode = #tpu.pipeline_mode<synchronous>, transform_indices = @transform_1, window_bounds = array<i64: 4, 64>}, {pipeline_mode = #tpu.pipeline_mode<synchronous>, transform_indices = @transform_2, window_bounds = array<i64: 4, 1>}, {pipeline_mode = #tpu.pipeline_mode<synchronous>, transform_indices = @transform_3, window_bounds = array<i64: 64, 4>}, {pipeline_mode = #tpu.pipeline_mode<synchronous>, transform_indices = @transform_4, window_bounds = array<i64: 64, 1>}, {transform_indices = @transform_5, window_bounds = array<i64: 1, 64, 256>}]} {
    %c0 = arith.constant 0 : index
    %c0_0 = arith.constant 0 : index
    %c0_1 = arith.constant 0 : index
    %0 = vector.load %arg1[%c0, %c0_0, %c0_1] : memref<1x64x256xf32, #tpu.memory_space<vmem>>, vector<1x64x256xf32>
    %1 = vector.shape_cast %0 : vector<1x64x256xf32> to vector<64x256xf32>
    %cst = arith.constant dense<0.000000e+00> : vector<64xf32>
    %2 = vector.multi_reduction <add>, %1, %cst [1] : vector<64x256xf32> to vector<64xf32>
    %3 = vector.shape_cast %2 : vector<64xf32> to vector<64x1xf32>
    %cst_2 = arith.constant 3.906250e-03 : f32
    %4 = vector.broadcast %cst_2 : f32 to vector<64x1xf32>
    %5 = arith.mulf %3, %4 : vector<64x1xf32>
    %c0_3 = arith.constant 0 : index
    %c0_4 = arith.constant 0 : index
    %6 = vector.load %arg2[%c0_3, %c0_4] : memref<4x64xf32, #tpu.memory_space<vmem>>, vector<4x64xf32>
    %cst_5 = arith.constant dense<0.000000e+00> : vector<4x1xf32>
    %7 = tpu.matmul %6, %5, %cst_5 {dimension_numbers = #tpu.dot_dimension_numbers<[1], [0], [0], [1], [0, 0, 1, 1], [], []>} : vector<4x64xf32>, vector<64x1xf32>, vector<4x1xf32> -> vector<4x1xf32>
    %c0_6 = arith.constant 0 : index
    %c0_7 = arith.constant 0 : index
    %8 = vector.load %arg3[%c0_6, %c0_7] : memref<4x1xf32, #tpu.memory_space<vmem>>, vector<4x1xf32>
    %9 = arith.addf %7, %8 : vector<4x1xf32>
    %cst_8 = arith.constant 0.000000e+00 : f32
    %10 = vector.broadcast %cst_8 : f32 to vector<4x1xf32>
    %11 = arith.maximumf %9, %10 : vector<4x1xf32>
    %c0_9 = arith.constant 0 : index
    %c0_10 = arith.constant 0 : index
    %12 = vector.load %arg4[%c0_9, %c0_10] : memref<64x4xf32, #tpu.memory_space<vmem>>, vector<64x4xf32>
    %cst_11 = arith.constant dense<0.000000e+00> : vector<64x1xf32>
    %13 = tpu.matmul %12, %11, %cst_11 {dimension_numbers = #tpu.dot_dimension_numbers<[1], [0], [0], [1], [0, 0, 1, 1], [], []>} : vector<64x4xf32>, vector<4x1xf32>, vector<64x1xf32> -> vector<64x1xf32>
    %c0_12 = arith.constant 0 : index
    %c0_13 = arith.constant 0 : index
    %14 = vector.load %arg5[%c0_12, %c0_13] : memref<64x1xf32, #tpu.memory_space<vmem>>, vector<64x1xf32>
    %15 = arith.addf %13, %14 : vector<64x1xf32>
    %cst_14 = arith.constant 0.000000e+00 : f32
    %16 = vector.broadcast %cst_14 : f32 to vector<64x1xf32>
    %17 = arith.subf %16, %15 : vector<64x1xf32>
    %18 = math.exp %17 : vector<64x1xf32>
    %cst_15 = arith.constant 1.000000e+00 : f32
    %19 = vector.broadcast %cst_15 : f32 to vector<64x1xf32>
    %20 = arith.addf %19, %18 : vector<64x1xf32>
    %cst_16 = arith.constant 1.000000e+00 : f32
    %21 = vector.broadcast %cst_16 : f32 to vector<64x1xf32>
    %22 = arith.divf %21, %20 : vector<64x1xf32>
    %23 = vector.broadcast %22 : vector<64x1xf32> to vector<64x256xf32>
    %24 = arith.mulf %1, %23 : vector<64x256xf32>
    %c0_17 = arith.constant 0 : index
    %c0_18 = arith.constant 0 : index
    %c0_19 = arith.constant 0 : index
    %25 = vector.load %arg6[%c0_17, %c0_18, %c0_19] : memref<1x64x256xf32, #tpu.memory_space<vmem>>, vector<1x64x256xf32>
    %26 = vector.shape_cast %25 : vector<1x64x256xf32> to vector<64x256xf32>
    %27 = vector.shape_cast %24 : vector<64x256xf32> to vector<1x64x256xf32>
    tpu.vector_store %arg6[%c0_17, %c0_18, %c0_19], %27 {strides = array<i32>} : memref<1x64x256xf32, #tpu.memory_space<vmem>>, vector<1x64x256xf32>,
    return
  }
  func.func @transform_0(%arg0: i32) -> (i32, i32, i32) {
    %c0_i32 = arith.constant 0 : i32
    %c0_i32_0 = arith.constant 0 : i32
    %c0_i32_1 = arith.constant 0 : i32
    return %arg0, %c0_i32, %c0_i32_0 : i32, i32, i32
  }
  func.func @transform_1(%arg0: i32) -> (i32, i32) {
    %c0_i32 = arith.constant 0 : i32
    %c0_i32_0 = arith.constant 0 : i32
    %c0_i32_1 = arith.constant 0 : i32
    return %c0_i32, %c0_i32_0 : i32, i32
  }
  func.func @transform_2(%arg0: i32) -> (i32, i32) {
    %c0_i32 = arith.constant 0 : i32
    %c0_i32_0 = arith.constant 0 : i32
    %c0_i32_1 = arith.constant 0 : i32
    return %c0_i32, %c0_i32_0 : i32, i32
  }
  func.func @transform_3(%arg0: i32) -> (i32, i32) {
    %c0_i32 = arith.constant 0 : i32
    %c0_i32_0 = arith.constant 0 : i32
    %c0_i32_1 = arith.constant 0 : i32
    return %c0_i32, %c0_i32_0 : i32, i32
  }
  func.func @transform_4(%arg0: i32) -> (i32, i32) {
    %c0_i32 = arith.constant 0 : i32
    %c0_i32_0 = arith.constant 0 : i32
    %c0_i32_1 = arith.constant 0 : i32
    return %c0_i32, %c0_i32_0 : i32, i32
  }
  func.func @transform_5(%arg0: i32) -> (i32, i32, i32) {
    %c0_i32 = arith.constant 0 : i32
    %c0_i32_0 = arith.constant 0 : i32
    %c0_i32_1 = arith.constant 0 : i32
    return %arg0, %c0_i32, %c0_i32_0 : i32, i32, i32
  }
}

</mosaic_0001>

<bundles_post_ra>
// kernel: ca_layer.1
= control target key start
LH: loop header
LB: loop body
LE: loop exit
PB: predicated region body
PF: predicated region fallthrough
CT: control target
= control target key end

     0   :  { %s849_s18 = smov 0   ;;  %s1017_s0 = inlined_call_operand.vmem [shape: f32[2,64,256], index: 0, kind: input, shape index: {}]   ;;  %s1018_s1 = inlined_call_operand.vmem [shape: f32[4,64], index: 1, kind: input, shape index: {}]   ;;  %s1019_s2 = inlined_call_operand.vmem [shape: f32[4,1], index: 2, kind: input, shape index: {}]   ;;  %s1020_s3 = inlined_call_operand.vmem [shape: f32[64,4], index: 3, kind: input, shape index: {}]   ;;  %s1021_s4 = inlined_call_operand.vmem [shape: f32[64,1], index: 4, kind: input, shape index: {}]   ;;  %s1022_s5 = inlined_call_operand.vmem [shape: f32[2,64,256], index: 5, kind: output, shape index: {}]  }
   0x1 LB: > { %s675_s19 = sadd.s32 4294967295, %s813_s18   ;;  %p679_p0 = scmp.ge.s32.totalorder %s813_s18, 1  ;;  %s813_s18 = sphi %s849_s18, %s15_s18  }
   0x2   : > { %p187_p1 = scmp.lt.s32.totalorder %s813_s18, 3 }
   0x4   : > { %p188_p2 = pnand %p679_p0, %p187_p1 }
   0x5   : > { %p215_p3 = scmp.lt.s32.totalorder (!%p188_p2), %s675_s19, 1  ;;  %v815_v24 = vmov (!%p188_p2), 0.0|0.0   ;;  %vm816_vm0 = vmmov (!%p188_p2), 0   ;;  %v817_v25 = vmov (!%p188_p2), 0.0   ;;  %v273_v46 = vld [vmem:[%s1018_s1] sm:$0xf] (!%p188_p2) }
   0x6   : > { %191 = sbr.rel (%p188_p2) target bundleno = 800 (0x320), region = 40  ;;  %749 = vmatprep.subr.bf16.mxu0 (!%p188_p2), %v815_v24  ;;  %732 = vmatprep.mubr.msk.f32.mxu0 (!%p188_p2), %vm816_vm0, %v817_v25  ;;  %vm275_vm1 = vcmask (!%p188_p2), 523264   ;;  %v350_v47 = vld [vmem:[%s1020_s3] sm:$0xff] (!%p188_p2)  ;;  %vm366_vm2 = vcmask (!%p188_p2), 31744   ;;  %vm391_vm3 = vcmask (!%p188_p2), 1043456   ;;  %v351_v53 = vld [vmem:[%s1020_s3 + $0x8] sm:$0xff] (!%p188_p2) }
   0x7   : > { %737 = vmatprep.mubr.msk.f32.mxu1 (!%p188_p2), %vm366_vm2, %v350_v47  ;;  %v274_v48 = vld [vmem:[%s1019_s2] sm:$0xf] (!%p188_p2)  ;;  %v352_v54 = vld [vmem:[%s1020_s3 + $0x10] sm:$0xff] (!%p188_p2)  ;;  %v353_v55 = vld [vmem:[%s1020_s3 + $0x18] sm:$0xff] (!%p188_p2)  ;;  %v818_v60 = vmov (!%p188_p2), 0  }
   0x8   : > { %v354_v56 = vld [vmem:[%s1020_s3 + $0x20] sm:$0xff] (!%p188_p2)  ;;  %v355_v57 = vld [vmem:[%s1020_s3 + $0x28] sm:$0xff] (!%p188_p2)  ;;  %v356_v58 = vld [vmem:[%s1020_s3 + $0x30] sm:$0xff] (!%p188_p2)  ;;  %774 = vset.pattern.permute.xlu1 (!%p188_p2), %v818_v60  ;;  %773 = vset.pattern.permute.xlu0 (!%p188_p2), %v818_v60 }
   0x9   : > { %v357_v59 = vld [vmem:[%s1020_s3 + $0x38] sm:$0xff] (!%p188_p2)  ;;  %v359_v61 = vld [vmem:[%s1021_s4 + $0x8] sm:$0xff] (!%p188_p2)  ;;  %v358_v62 = vld [vmem:[%s1021_s4] sm:$0xff] (!%p188_p2) }
   0xd   : > { %s1024_s19 = smov (!%p215_p3, %s675_s19), 1 }
   0xe   : > { %s696_s20 = sshll.u32 %s1024_s19, 7 }
   0xf   : > { %s219_s23 = scalar_lea.vmem %s1017_s0, %s696_s20  ;;  %s980_s15 = scalar_lea.vmem %s1022_s5, %s696_s20 }
  0x10   : > { %v865_v0 = vld [vmem:[%s219_s23 + $0x20] sm:$0xff]  ;;  %v867_v1 = vld [vmem:[%s219_s23 + $0x28] sm:$0xff]  ;;  %v875_v5 = vld [vmem:[%s219_s23 + $0x30] sm:$0xff] }
  0x11   : > { %v869_v2 = vld [vmem:[%s219_s23] sm:$0xff]  ;;  %v247_v3 = vadd.f32 %v867_v1, %v865_v0  ;;  %v873_v4 = vld [vmem:[%s219_s23 + $0x8] sm:$0xff]  ;;  %v877_v6 = vld [vmem:[%s219_s23 + $0x38] sm:$0xff] }
  0x12   : > { %v241_v7 = vadd.f32 %v873_v4, %v869_v2  ;;  %v881_v8 = vld [vmem:[%s219_s23 + $0x10] sm:$0xff]  ;;  %v883_v9 = vld [vmem:[%s219_s23 + $0x18] sm:$0xff]  ;;  %v250_v10 = vadd.f32 %v877_v6, %v875_v5  ;;  %v893_v14 = vld [vmem:[%s219_s23 + $0x40] sm:$0xff] }
  0x13   : > { %248 = vadd.xlane.f32.xlu1 %v247_v3  ;;  %v244_v11 = vadd.f32 %v883_v9, %v881_v8  ;;  %v889_v12 = vld [vmem:[%s219_s23 + $0x50] sm:$0xff]  ;;  %v891_v13 = vld [vmem:[%s219_s23 + $0x58] sm:$0xff]  ;;  %v895_v15 = vld [vmem:[%s219_s23 + $0x48] sm:$0xff] }
  0x14   : > { %242 = vadd.xlane.f32.xlu0 %v241_v7  ;;  %v256_v16 = vadd.f32 %v891_v13, %v889_v12  ;;  %v253_v17 = vadd.f32 %v895_v15, %v893_v14  ;;  %v901_v18 = vld [vmem:[%s219_s23 + $0x70] sm:$0xff]  ;;  %v903_v19 = vld [vmem:[%s219_s23 + $0x78] sm:$0xff]  ;;  %v905_v20 = vld [vmem:[%s219_s23 + $0x60] sm:$0xff] }
  0x15   : > { %v907_v21 = vld [vmem:[%s219_s23 + $0x68] sm:$0xff]  ;;  %v262_v22 = vadd.f32 %v903_v19, %v901_v18 }
  0x16   : > { %v259_v23 = vadd.f32 %v907_v21, %v905_v20 }
  0x17   : > { %251 = vadd.xlane.f32.xlu1 %v250_v10 }
  0x18   : > { %245 = vadd.xlane.f32.xlu0 %v244_v11  ;;  %v361_v11 = vld [vmem:[%s1021_s4 + $0x18] sm:$0xff] }
  0x1b   : > { %257 = vadd.xlane.f32.xlu1 %v256_v16 }
  0x1c   : > { %254 = vadd.xlane.f32.xlu0 %v253_v17  ;;  %v360_v17 = vld [vmem:[%s1021_s4 + $0x10] sm:$0xff] }
  0x1f   : > { %263 = vadd.xlane.f32.xlu1 %v262_v22 }
  0x20   : > { %260 = vadd.xlane.f32.xlu0 %v259_v23 }
  0xa0   : > { %v249_v26 = vpop.xlane.xlu1 %248 }
  0xa1   : > { %v243_v27 = vpop.xlane.xlu0 %242  ;;  %v267_v32 = vmul.f32 0.00390625, %v249_v26 }
  0xa2   : > { %v265_v30 = vmul.f32 0.00390625, %v243_v27 }
  0xa4   : > { %v252_v28 = vpop.xlane.xlu1 %251 }
  0xa5   : > { %v246_v29 = vpop.xlane.xlu0 %245  ;;  %v268_v33 = vmul.f32 0.00390625, %v252_v28 }
  0xa6   : > { %v266_v31 = vmul.f32 0.00390625, %v246_v29  ;;  %v363_v29 = vld [vmem:[%s1021_s4 + $0x28] sm:$0xff] }
  0xa7   : > { %v753_v39 = vpack.c.bf16 %v268_v33, %v267_v32 }
  0xa8   : > { %v750_v34 = vpack.c.bf16 %v266_v31, %v265_v30  ;;  %v258_v35 = vpop.xlane.xlu1 %257  ;;  %v362_v31 = vld [vmem:[%s1021_s4 + $0x20] sm:$0xff] }
  0xa9   : > { %v255_v36 = vpop.xlane.xlu0 %254  ;;  %v270_v37 = vmul.f32 0.00390625, %v258_v35 }
  0xaa   : > { %751 = vmatpush3.bf16.msra.mxu0 %v750_v34  ;;  %v269_v38 = vmul.f32 0.00390625, %v255_v36 }
  0xab   : > { %752 = vmatprep.subr.bf16.mxu0 %v815_v24 }
  0xac   : > { %v264_v40 = vpop.xlane.xlu1 %263  ;;  %v756_v42 = vpack.c.bf16 %v270_v37, %v269_v38 }
  0xad   : > { %v261_v41 = vpop.xlane.xlu0 %260  ;;  %v272_v43 = vmul.f32 0.00390625, %v264_v40  ;;  %v364_v40 = vld [vmem:[%s1021_s4 + $0x30] sm:$0xff] }
  0xae   : > { %754 = vmatpush3.bf16.msra.mxu0 %v753_v39  ;;  %v271_v44 = vmul.f32 0.00390625, %v261_v41 }
  0xaf   : > { %755 = vmatprep.subr.bf16.mxu0 %v815_v24 }
  0xb0   : > { %v759_v45 = vpack.c.bf16 %v272_v43, %v271_v44 }
  0xb2   : > { %757 = vmatpush3.bf16.msra.mxu0 %v756_v42  ;;  %v365_v42 = vld [vmem:[%s1021_s4 + $0x38] sm:$0xff] }
  0xb3   : > { %758 = vmatprep.subr.bf16.mxu0 %v815_v24 }
  0xb6   : > { %760 = vmatpush3.bf16.msra.mxu0 %v759_v45 }
  0xb9   : > { %733 = vmatmul.mubr.msk.f32.vlgmr.msra.gmra.mrb[0].mxu0 %vm275_vm1, %v273_v46 }
 0x18c   : > { %v345_v49 = vpop.f32.mrb[0].mxu0 }
 0x18d   : > { %v346_v50 = vadd.f32 %v345_v49, %v274_v48  ;;  %v734_v51 = vpop.f32.mrb[1].mxu0 }
 0x18f   : > { %v349_v52 = vmax.f32 %v346_v50, 0.0 }
 0x191   : > { %735 = vmatprep.subr.msk.mxu1 %vm391_vm3, %v349_v52 }
 0x192   : > { %736 = vmatpush3.msk.msra.mxu1 %vm391_vm3, %v349_v52 }
 0x193   : > { %738 = vmatmul.mubr.msk.f32.vlgmr.msra.gmra.mrb[0].mxu1 %vm366_vm2, %v351_v53 }
 0x194   : > { %740 = vmatprep.mubr.msk.f32.mxu1 %vm366_vm2, %v352_v54 }
 0x197   : > { %741 = vmatmul.mubr.msk.f32.gmra.mrb[2].mxu1 %vm366_vm2, %v353_v55 }
 0x198   : > { %743 = vmatprep.mubr.msk.f32.mxu1 %vm366_vm2, %v354_v56 }
 0x19b   : > { %744 = vmatmul.mubr.msk.f32.gmra.mrb[4].mxu1 %vm366_vm2, %v355_v57 }
 0x19c   : > { %746 = vmatprep.mubr.msk.f32.mxu1 %vm366_vm2, %v356_v58 }
 0x19f   : > { %747 = vmatmul.mubr.msk.f32.gmra.mrb[6].mxu1 %vm366_vm2, %v357_v59 }
 0x266   : > { %v739_v63 = vpop.f32.mrb[0].mxu1 }
 0x267   : > { %v467_v3 = vadd.f32 %v739_v63, %v359_v61  ;;  %v461_v7 = vpop.f32.mrb[1].mxu1 }
 0x268   : > { %v462_v10 = vadd.f32 %v461_v7, %v358_v62 }
 0x269   : > { %v501_v16 = vsub.f32 0.0, %v467_v3 }
 0x26a   : > { %v500_v22 = vsub.f32 0.0, %v462_v10  ;;  %v742_v23 = vpop.f32.mrb[2].mxu1 }
 0x26b   : > { %v510_v24 = vmul.f32 1.442695, %v501_v16  ;;  %v477_v25 = vadd.f32 %v742_v23, %v361_v11  ;;  %v471_v26 = vpop.f32.mrb[3].mxu1 }
 0x26c   : > { %v508_v27 = vmul.f32 1.442695, %v500_v22  ;;  %v472_v28 = vadd.f32 %v471_v26, %v360_v17 }
 0x26d   : > { %775 = vpow2.f32 %v510_v24  ;;  %v503_v30 = vsub.f32 0.0, %v477_v25 }
 0x26e   : > { %777 = vpow2.f32 %v508_v27  ;;  %v502_v32 = vsub.f32 0.0, %v472_v28  ;;  %v745_v33 = vpop.f32.mrb[4].mxu1 }
 0x26f   : > { %v514_v34 = vmul.f32 1.442695, %v503_v30  ;;  %v487_v35 = vadd.f32 %v745_v33, %v363_v29  ;;  %v481_v36 = vpop.f32.mrb[5].mxu1 }
 0x270   : > { %v512_v37 = vmul.f32 1.442695, %v502_v32  ;;  %v482_v38 = vadd.f32 %v481_v36, %v362_v31 }
 0x271   : > { %779 = vpow2.f32 %v514_v34  ;;  %v505_v39 = vsub.f32 0.0, %v487_v35 }
 0x272   : > { %781 = vpow2.f32 %v512_v37  ;;  %v504_v41 = vsub.f32 0.0, %v482_v38  ;;  %v748_v43 = vpop.f32.mrb[6].mxu1 }
 0x273   : > { %v518_v44 = vmul.f32 1.442695, %v505_v39  ;;  %v491_v45 = vpop.f32.mrb[7].mxu1  ;;  %v497_v48 = vadd.f32 %v748_v43, %v365_v42 }
 0x274   : > { %v492_v46 = vadd.f32 %v491_v45, %v364_v40  ;;  %v516_v47 = vmul.f32 1.442695, %v504_v41 }
 0x275   : > { %783 = vpow2.f32 %v518_v44  ;;  %v507_v55 = vsub.f32 0.0, %v497_v48 }
 0x276   : > { %v506_v49 = vsub.f32 0.0, %v492_v46  ;;  %785 = vpow2.f32 %v516_v47 }
 0x277   : > { %v776_v50 = vpop.eup %775  ;;  %v522_v59 = vmul.f32 1.442695, %v507_v55 }
 0x278   : > { %v778_v51 = vpop.eup %777  ;;  %v525_v52 = vadd.f32 1.0, %v776_v50  ;;  %v520_v53 = vmul.f32 1.442695, %v506_v49 }
 0x279   : > { %v524_v54 = vadd.f32 1.0, %v778_v51 }
 0x27a   : > { %787 = vrcp.f32 %v525_v52 }
 0x27b   : > { %v780_v56 = vpop.eup %779  ;;  %789 = vrcp.f32 %v524_v54 }
 0x27c   : > { %v782_v57 = vpop.eup %781  ;;  %v527_v58 = vadd.f32 1.0, %v780_v56  ;;  %791 = vpow2.f32 %v520_v53 }
 0x27d   : > { %v526_v60 = vadd.f32 1.0, %v782_v57 }
 0x27e   : > { %793 = vrcp.f32 %v527_v58 }
 0x27f   : > { %v784_v61 = vpop.eup %783  ;;  %795 = vpow2.f32 %v522_v59 }
 0x280   : > { %v529_v62 = vadd.f32 1.0, %v784_v61  ;;  %797 = vrcp.f32 %v526_v60  ;;  %v786_v63 = vpop.eup %785 }
 0x281   : > { %v528_v11 = vadd.f32 1.0, %v786_v63 }
 0x282   : > { %799 = vrcp.f32 %v529_v62 }
 0x283   : > { %801 = vrcp.f32 %v528_v11 }
 0x284   : > { %v788_v3 = vpop.eup %787 }
 0x285   : > { %v790_v7 = vpop.eup %789  ;;  %555 = vperm.xlu1 %774, %v788_v3  }
 0x286   : > { %v792_v10 = vpop.eup %791  ;;  %550 = vperm.xlu0 %773, %v790_v7  }
 0x287   : > { %v530_v17 = vadd.f32 1.0, %v792_v10 }
 0x288   : > { %v794_v16 = vpop.eup %793 }
 0x289   : > { %565 = vperm.xlu1 %774, %v794_v16   ;;  %v796_v22 = vpop.eup %795  ;;  %803 = vrcp.f32 %v530_v17 }
 0x28a   : > { %v798_v23 = vpop.eup %797  ;;  %v531_v25 = vadd.f32 1.0, %v796_v22 }
 0x28c   : > { %v800_v24 = vpop.eup %799  ;;  %805 = vrcp.f32 %v531_v25 }
 0x28d   : > { %560 = vperm.xlu1 %774, %v798_v23   ;;  %v802_v26 = vpop.eup %801 }
 0x291   : > { %575 = vperm.xlu1 %774, %v800_v24  }
 0x293   : > { %v804_v27 = vpop.eup %803 }
 0x295   : > { %570 = vperm.xlu1 %774, %v802_v26  }
 0x296   : > { %v806_v28 = vpop.eup %805 }
 0x299   : > { %580 = vperm.xlu1 %774, %v804_v27  }
 0x29d   : > { %585 = vperm.xlu1 %774, %v806_v28  }
 0x304   : > { %v556_v29 = vpop.permute.xlu1 %555 }
 0x305   : > { %v590_v30 = vmul.f32 %v556_v29, %v881_v8  ;;  %v591_v31 = vmul.f32 %v556_v29, %v883_v9  ;;  %v551_v32 = vpop.permute.xlu0 %550 }
 0x306   : > { %v588_v33 = vmul.f32 %v551_v32, %v869_v2  ;;  %v589_v34 = vmul.f32 %v551_v32, %v873_v4 }
 0x307   : > { %606 = vst [vmem:[%s980_s15 + $0x10] sm:$0xff] %v590_v30  ;;  %607 = vst [vmem:[%s980_s15 + $0x18] sm:$0xff] %v591_v31 }
 0x308   : > { %604 = vst [vmem:[%s980_s15] sm:$0xff] %v588_v33  ;;  %605 = vst [vmem:[%s980_s15 + $0x8] sm:$0xff] %v589_v34  ;;  %v566_v35 = vpop.permute.xlu1 %565 }
 0x309   : > { %v594_v36 = vmul.f32 %v566_v35, %v875_v5  ;;  %v595_v8 = vmul.f32 %v566_v35, %v877_v6 }
 0x30b   : > { %610 = vst [vmem:[%s980_s15 + $0x30] sm:$0xff] %v594_v36  ;;  %611 = vst [vmem:[%s980_s15 + $0x38] sm:$0xff] %v595_v8 }
 0x30c   : > { %v561_v9 = vpop.permute.xlu1 %560 }
 0x30d   : > { %v592_v2 = vmul.f32 %v561_v9, %v865_v0  ;;  %v593_v4 = vmul.f32 %v561_v9, %v867_v1 }
 0x30f   : > { %608 = vst [vmem:[%s980_s15 + $0x20] sm:$0xff] %v592_v2  ;;  %609 = vst [vmem:[%s980_s15 + $0x28] sm:$0xff] %v593_v4 }
 0x310   : > { %v576_v37 = vpop.permute.xlu1 %575 }
 0x311   : > { %v598_v38 = vmul.f32 %v576_v37, %v889_v12  ;;  %v599_v5 = vmul.f32 %v576_v37, %v891_v13 }
 0x313   : > { %614 = vst [vmem:[%s980_s15 + $0x50] sm:$0xff] %v598_v38  ;;  %615 = vst [vmem:[%s980_s15 + $0x58] sm:$0xff] %v599_v5 }
 0x314   : > { %v571_v6 = vpop.permute.xlu1 %570 }
 0x315   : > { %v596_v39 = vmul.f32 %v571_v6, %v893_v14  ;;  %v597_v0 = vmul.f32 %v571_v6, %v895_v15 }
 0x317   : > { %612 = vst [vmem:[%s980_s15 + $0x40] sm:$0xff] %v596_v39  ;;  %613 = vst [vmem:[%s980_s15 + $0x48] sm:$0xff] %v597_v0 }
 0x318   : > { %v581_v1 = vpop.permute.xlu1 %580 }
 0x319   : > { %v600_v40 = vmul.f32 %v581_v1, %v905_v20  ;;  %v601_v41 = vmul.f32 %v581_v1, %v907_v21 }
 0x31b   : > { %616 = vst [vmem:[%s980_s15 + $0x60] sm:$0xff] %v600_v40  ;;  %617 = vst [vmem:[%s980_s15 + $0x68] sm:$0xff] %v601_v41 }
 0x31c   : > { %v586_v12 = vpop.permute.xlu1 %585 }
 0x31d   : > { %v602_v13 = vmul.f32 %v586_v12, %v901_v18  ;;  %v603_v42 = vmul.f32 %v586_v12, %v903_v19 }
 0x31f   : > { %618 = vst [vmem:[%s980_s15 + $0x70] sm:$0xff] %v602_v13  ;;  %619 = vst [vmem:[%s980_s15 + $0x78] sm:$0xff] %v603_v42 }
 0x320 PF: > { %s15_s18 = sadd.s32 1, %s813_s18  }
 0x321   : > { %p12_p4 = scmp.ge.s32.totalorder %s15_s18, 4  }
 0x323   :  { %14 = sbr.rel (!%p12_p4) target bundleno = 1 (0x1), region = 70 }

</bundles_post_ra>
